<compile_context>
chip_gen: v7x
topology: tpu7x:2x2x1
jax: 0.10.0
libtpu: 0.0.40
codegen_flags: <defaults>
</compile_context>

<pallas_src>
import jax
import jax.numpy as jnp
from jax.experimental import pallas as pl
from jax.experimental.pallas import tpu as pltpu

_LANE = 128
_VMEM_BUDGET_BYTES = 24 << 20       # live double-buffered pipeline VMEM target
_VMEM_LIMIT_BYTES = 32 << 20        # scoped-VMEM limit; <= physical on v5e/v6e/v7x
_FALLBACK_X_BLOCK_BYTES = 2 << 20   # ~2 MiB of x per step on the N%128!=0 path
_MIN_PALLAS_BYTES = 1 << 20         # below this, let XLA fuse the add


def _sublane_pack(itemsize: int) -> int:
    # Packed sublanes per vreg: f32 -> 8, bf16 -> 16, int8/fp8 -> 32.
    return max(8, 8 * (4 // max(itemsize, 1)))


# -----------------------------------------------------------------------------
# Setup-time ("register_buffer") code — runs once, outside the hot path.
# -----------------------------------------------------------------------------
def sinusoid_table(n_position: int, d_hid: int) -> jnp.ndarray:
    """Equivalent of _get_sinusoid_encoding_table -> shape (1, n_position, d_hid)."""
    # TODO(synk): PyTorch builds the table in NumPy float64 before casting; this
    # f32 version differs at ~1e-7, below fp32 resolution.
    pos = jnp.arange(n_position, dtype=jnp.float32)[:, None]            # (P, 1)
    j = jnp.arange(d_hid)                                                # (D,)
    exponent = (2 * (j // 2)).astype(jnp.float32) / float(d_hid)         # 2*(j//2)/d_hid
    angles = pos / jnp.power(10000.0, exponent)[None, :]                 # (P, D)
    table = jnp.where((j % 2) == 0, jnp.sin(angles), jnp.cos(angles))    # sin even / cos odd
    return table[None].astype(jnp.float32)                               # (1, P, D)


def make_pos_embed_nchw_flat(pos_table: jnp.ndarray, C: int, H: int, W: int,
                             dtype=jnp.float32) -> jnp.ndarray:
    """Hoisted out of the hot path: slice + reshape + NHWC->NCHW permute, then
    flatten to a contiguous lane-friendly (1, C*H*W) row."""
    assert pos_table.shape[-1] == C, "d_hid must equal channel count C"
    assert H * W <= pos_table.shape[1], "n_position must cover H*W"
    pe = pos_table[:, : H * W, :].reshape(1, H, W, C)     # (1, H, W, C)
    pe = jnp.transpose(pe, (0, 3, 1, 2))                  # (1, C, H, W)
    return pe.reshape(1, C * H * W).astype(dtype)         # (1, N)


# -----------------------------------------------------------------------------
# Kernel: pure VPU elementwise add; pos broadcasts over the leading (batch) dim.
# -----------------------------------------------------------------------------
def _add_kernel(x_ref, pos_ref, o_ref):
    o_ref[...] = x_ref[...] + pos_ref[...]


# -----------------------------------------------------------------------------
# Tile sizing
# -----------------------------------------------------------------------------
def _primary_row_tile(rows: int, B: int, itemsize: int, pack: int) -> int:
    # Live pipeline VMEM ~= 2 buffers x (x + out + pos)
    #                     = 2 * ts * 128 * itemsize * (2*B + 1).
    ts = _VMEM_BUDGET_BYTES // (2 * _LANE * itemsize * (2 * B + 1))
    ts = max(pack, (ts // pack) * pack)
    if ts >= rows:
        # Everything fits in one tile; split into two "parallel" steps when
        # possible so both v7x TensorCores get work (harmless on v5e/v6e).
        half = -(-rows // 2)
        half = -(-half // pack) * pack
        ts = half if half < rows else rows
    return ts


def _fallback_tiles(B: int, N: int, itemsize: int, pack: int):
    # Don't divide the budget by B: pick a packed-sublane batch block and a
    # large lane-dense column block targeting ~2 MiB of x per step.
    target_elems = _FALLBACK_X_BLOCK_BYTES // itemsize
    if B <= pack:
        tb = B                                          # full extent (allowed)
    else:
        tb = min((B // pack) * pack, 4 * pack)          # multiple of packed sublanes
    tn = max(_LANE, (target_elems // tb) // _LANE * _LANE)
    if tn >= N:
        tn = N                                          # full extent (allowed)
    return tb, tn


# -----------------------------------------------------------------------------
# Forward
# -----------------------------------------------------------------------------
def pos_embed_sinusoid_forward(x: jnp.ndarray, pos_flat: jnp.ndarray,
                               *, use_pallas=None) -> jnp.ndarray:
    """x: (B, C, H, W); pos_flat: (1, C*H*W) precomputed NCHW-flattened embedding."""
    B, C, H, W = x.shape
    N = C * H * W
    assert pos_flat.shape == (1, N)
    if pos_flat.dtype != x.dtype:
        pos_flat = pos_flat.astype(x.dtype)
    itemsize = jnp.dtype(x.dtype).itemsize
    pack = _sublane_pack(itemsize)

    if use_pallas is None:
        use_pallas = (B + 1) * N * itemsize >= _MIN_PALLAS_BYTES
    if not use_pallas:
        # Tiny tensors: pallas_call launch/per-step overhead dwarfs the add.
        return (x.reshape(B, N) + pos_flat).reshape(B, C, H, W)

    if N % _LANE == 0:
        # Primary path: lane/sublane-dense 3-D view, batch folded into the block.
        rows = N // _LANE
        ts = _primary_row_tile(rows, B, itemsize, pack)
        x3 = x.reshape(B, rows, _LANE)
        p3 = pos_flat.reshape(1, rows, _LANE)
        out = pl.pallas_call(
            _add_kernel,
            out_shape=jax.ShapeDtypeStruct((B, rows, _LANE), x.dtype),
            grid_spec=pltpu.PrefetchScalarGridSpec(
                num_scalar_prefetch=0,
                grid=(pl.cdiv(rows, ts),),
                in_specs=[
                    pl.BlockSpec((B, ts, _LANE), lambda j: (0, j, 0)),
                    pl.BlockSpec((1, ts, _LANE), lambda j: (0, j, 0)),
                ],
                out_specs=pl.BlockSpec((B, ts, _LANE), lambda j: (0, j, 0)),
            ),
            compiler_params=pltpu.CompilerParams(
                dimension_semantics=("parallel",),
                vmem_limit_bytes=_VMEM_LIMIT_BYTES),
            input_output_aliases={0: 0},      # write result back into x's buffer
        )(x3, p3)
        return out.reshape(B, C, H, W)

    # Fallback path: N not a multiple of 128 -> lane-dense 2-D tiling over (B, N).
    tb, tn = _fallback_tiles(B, N, itemsize, pack)
    x2 = x.reshape(B, N)
    out = pl.pallas_call(
        _add_kernel,
        out_shape=jax.ShapeDtypeStruct((B, N), x.dtype),
        grid_spec=pltpu.PrefetchScalarGridSpec(
            num_scalar_prefetch=0,
            # pos-tile axis outer, batch axis inner -> pos DMA skipped across
            # consecutive batch steps.
            grid=(pl.cdiv(N, tn), pl.cdiv(B, tb)),
            in_specs=[
                pl.BlockSpec((tb, tn), lambda j, i: (i, j)),
                pl.BlockSpec((1, tn), lambda j, i: (0, j)),
            ],
            out_specs=pl.BlockSpec((tb, tn), lambda j, i: (i, j)),
        ),
        compiler_params=pltpu.CompilerParams(
            dimension_semantics=("parallel", "parallel"),
            vmem_limit_bytes=_VMEM_LIMIT_BYTES),
        input_output_aliases={0: 0},
    )(x2, pos_flat)
    return out.reshape(B, C, H, W)


# -----------------------------------------------------------------------------
# Self-test
# -----------------------------------------------------------------------------
if __name__ == "__main__":
    key = jax.random.PRNGKey(0)

    # ---- Primary path (N % 128 == 0): B=2, C=4, H=16, W=16 ----
    B, C, H, W = 2, 4, 16, 16
    n_position = 256
    x = jax.random.normal(key, (B, C, H, W), dtype=jnp.float32)

    pos_table = sinusoid_table(n_position, C)                          # (1, 256, C)
    pos_flat = make_pos_embed_nchw_flat(pos_table, C, H, W, x.dtype)   # (1, C*H*W)

    out = pos_embed_sinusoid_forward(x, pos_flat, use_pallas=True)
    out = jax.block_until_ready(out)

    ref = x + jnp.transpose(
        pos_table[:, : H * W, :].reshape(1, H, W, C), (0, 3, 1, 2))
    assert out.shape == (B, C, H, W)
    assert jnp.allclose(out, ref, atol=1e-6, rtol=1e-6)

    # Auto-gated small-input path (XLA fused add) matches too.
    out_small = pos_embed_sinusoid_forward(x, pos_flat)
    assert jnp.allclose(jax.block_until_ready(out_small), ref, atol=1e-6, rtol=1e-6)

    # ---- Fallback path (N % 128 != 0): B=2, C=4, H=10, W=10 ----
    B2, C2, H2, W2 = 2, 4, 10, 10
    x2 = jax.random.normal(jax.random.PRNGKey(1), (B2, C2, H2, W2), dtype=jnp.float32)
    pos_flat2 = make_pos_embed_nchw_flat(pos_table, C2, H2, W2, x2.dtype)
    out2 = pos_embed_sinusoid_forward(x2, pos_flat2, use_pallas=True)
    out2 = jax.block_until_ready(out2)
    ref2 = x2 + jnp.transpose(
        pos_table[:, : H2 * W2, :].reshape(1, H2, W2, C2), (0, 3, 1, 2))
    assert jnp.allclose(out2, ref2, atol=1e-6, rtol=1e-6)

    print("KERNEL_OK")
</pallas_src>

<mosaic_0001>
module attributes {stable_mosaic.version = 11 : i64} {
  func.func @_add_kernel(%arg0: i32, %arg1: memref<2x8x128xf32, #tpu.memory_space<vmem>>, %arg2: memref<1x8x128xf32, #tpu.memory_space<vmem>>, %arg3: memref<2x8x128xf32, #tpu.memory_space<vmem>>) attributes {dimension_semantics = [#tpu.dimension_semantics<parallel>], iteration_bounds = array<i64: 1>, scalar_prefetch = 0 : i64, scratch_operands = 0 : i64, tpu.core_type = #tpu.core_type<tc>, window_params = [{transform_indices = @transform_0, window_bounds = array<i64: 2, 8, 128>}, {transform_indices = @transform_1, window_bounds = array<i64: 1, 8, 128>}, {transform_indices = @transform_2, window_bounds = array<i64: 2, 8, 128>}]} {
    %c0 = arith.constant 0 : index
    %c0_0 = arith.constant 0 : index
    %c0_1 = arith.constant 0 : index
    %0 = vector.load %arg1[%c0, %c0_0, %c0_1] : memref<2x8x128xf32, #tpu.memory_space<vmem>>, vector<2x8x128xf32>
    %c0_2 = arith.constant 0 : index
    %c0_3 = arith.constant 0 : index
    %c0_4 = arith.constant 0 : index
    %1 = vector.load %arg2[%c0_2, %c0_3, %c0_4] : memref<1x8x128xf32, #tpu.memory_space<vmem>>, vector<1x8x128xf32>
    %2 = vector.broadcast %1 : vector<1x8x128xf32> to vector<2x8x128xf32>
    %3 = arith.addf %0, %2 : vector<2x8x128xf32>
    %c0_5 = arith.constant 0 : index
    %c0_6 = arith.constant 0 : index
    %c0_7 = arith.constant 0 : index
    %4 = vector.load %arg3[%c0_5, %c0_6, %c0_7] : memref<2x8x128xf32, #tpu.memory_space<vmem>>, vector<2x8x128xf32>
    tpu.vector_store %arg3[%c0_5, %c0_6, %c0_7], %3 {strides = array<i32>} : memref<2x8x128xf32, #tpu.memory_space<vmem>>, vector<2x8x128xf32>,
    return
  }
  func.func @transform_0(%arg0: i32) -> (i32, i32, i32) {
    %c0_i32 = arith.constant 0 : i32
    %c0_i32_0 = arith.constant 0 : i32
    %c0_i32_1 = arith.constant 0 : i32
    return %c0_i32, %arg0, %c0_i32_0 : i32, i32, i32
  }
  func.func @transform_1(%arg0: i32) -> (i32, i32, i32) {
    %c0_i32 = arith.constant 0 : i32
    %c0_i32_0 = arith.constant 0 : i32
    %c0_i32_1 = arith.constant 0 : i32
    return %c0_i32, %arg0, %c0_i32_0 : i32, i32, i32
  }
  func.func @transform_2(%arg0: i32) -> (i32, i32, i32) {
    %c0_i32 = arith.constant 0 : i32
    %c0_i32_0 = arith.constant 0 : i32
    %c0_i32_1 = arith.constant 0 : i32
    return %c0_i32, %arg0, %c0_i32_0 : i32, i32, i32
  }
}

</mosaic_0001>

<bundles_post_ra>
// kernel: tpu_custom_call.1
= control target key start
LH: loop header
LB: loop body
LE: loop exit
PB: predicated region body
PF: predicated region fallthrough
CT: control target
= control target key end

     0   :  { %7 = vsyncpa [#allocation3], 0  ;;  %s154_s0 = inlined_call_operand.hbm [shape: f32[2,8,128], index: 0, kind: input, shape index: {}, may-alias: {0,2}]   ;;  %s155_s1 = inlined_call_operand.vmem [shape: f32[1,8,128], index: 1, kind: input, shape index: {}]   ;;  %s156_s2 = inlined_call_operand.hbm [shape: f32[2,8,128], index: 2, kind: output, shape index: {}, may-alias: {0,2}]  }
   0x1   :  { %8 = vsyncpa [#allocation4], 0  ;;  %s102_s9 = smov [#allocation2]   ;;  %s54_s13 = scalar_lea.hbm %s154_s0, 256 }
   0x2   :  { %s14_s10 = sshll.u32 %s102_s9, 4  ;;  %p55_p0 = scmp.ne.s32.totalorder %s154_s0, %s54_s13  ;;  %s15_s10 = int_to_ptr.vmem [resolvable:$true] %s14_s10 }
   0x3   :  { %p58_p1 = scmp.lt.u32.totalorder %s54_s13, %s154_s0 }
   0x5   :  { %p60_p2 = pnand %p58_p1, %p55_p0 }
   0x7   :  { %63 = shalt.err (!%p60_p2)
}
   0x8   :  { %s64_s18 = scalar_lea.vmem %s15_s10, 256  ;;  %p69_p4 = scmp.lt.s32.totalorder %s15_s10, %s15_s10 }
   0x9   :  { %p65_p3 = scmp.ne.s32.totalorder %s15_s10, %s64_s18  ;;  %p70_p5 = scmp.lt.s32.totalorder %s64_s18, %s64_s18 }
   0xb   :  { %p71_p6 = por %p70_p5, %p69_p4 }
   0xd   :  { %p72_p7 = pnand %p71_p6, %p65_p3 }
   0xf   :  { %75 = shalt.err (!%p72_p7)
}
  0x10   :  { %s103_s19 = smov 128   ;;  %s104_s20 = smov 8  }
  0x11   :  { %20 = dma.hbm_to_vmem [thread:$0]  %s154_s0, 256, %s15_s10, [#allocation3], %s103_s19, %s103_s19, %s104_s20  }
  0x12   :  { %98 = dma.done.wait [#allocation3], 256  }
  0x13   :  { %99 = vsyncadd [#allocation3], 4294967040  ;;  %s105_s23 = smov [#allocation5]   ;;  %v26_v0 = vld [vmem:[#allocation2] sm:$0xff]  ;;  %v27_v2 = vld [vmem:[#allocation2 + $0x8] sm:$0xff] }
  0x14   :  { %s38_s24 = sshll.u32 %s105_s23, 4  ;;  %v28_v1 = vld [vmem:[%s155_s1] sm:$0xff]  ;;  %s39_s24 = int_to_ptr.vmem [resolvable:$true] %s38_s24 }
  0x15   :  { %v29_v3 = vadd.f32 %v28_v1, %v26_v0  ;;  %v30_v4 = vadd.f32 %v28_v1, %v27_v2  ;;  %s76_s27 = scalar_lea.vmem %s39_s24, 256  ;;  %p81_p9 = scmp.lt.s32.totalorder %s39_s24, %s39_s24 }
  0x16   :  { %p77_p8 = scmp.ne.s32.totalorder %s39_s24, %s76_s27  ;;  %p82_p10 = scmp.lt.s32.totalorder %s76_s27, %s76_s27 }
  0x17   :  { %31 = vst [vmem:[#allocation5] sm:$0xff] %v29_v3  ;;  %32 = vst [vmem:[#allocation5 + $0x8] sm:$0xff] %v30_v4 }
  0x18   :  { %p83_p11 = por %p82_p10, %p81_p9 }
  0x1a   :  { %p84_p12 = pnand %p83_p11, %p77_p8 }
  0x1c   :  { %87 = shalt.err (!%p84_p12)
}
  0x1d   :  { %s88_s29 = scalar_lea.hbm %s156_s2, 256 }
  0x1e   :  { %p89_p13 = scmp.ne.s32.totalorder %s156_s2, %s88_s29  ;;  %p92_p0 = scmp.lt.u32.totalorder %s88_s29, %s156_s2 }
  0x20   :  { %p94_p1 = pnand %p92_p0, %p89_p13 }
  0x22   :  { %97 = shalt.err (!%p94_p1)
}
  0x23   :  { %44 = dma.vmem_to_hbm [thread:$0]  %s39_s24, 256, %s156_s2, [#allocation4], %s103_s19, %s103_s19, %s104_s20  }
  0x24   :  { %100 = dma.done.wait [#allocation4], 256  }
  0x25   :  { %101 = vsyncadd [#allocation4], 4294967040 }
  0x26   :  { %48 = vsyncpa [#allocation3], 1 }
  0x27   :  { %49 = vsyncpa [#allocation4], 1 }

</bundles_post_ra>
